<compile_context>
chip_gen: v6e
topology: v6e:2x2x1
jax: 0.10.0
libtpu: 0.0.40
codegen_flags: <defaults>
</compile_context>

<pallas_src>
import math

import jax
import jax.numpy as jnp
import numpy as np
from jax.experimental import pallas as pl
from jax.experimental.pallas import tpu as pltpu

NEG_SLOPE = 0.01   # F.leaky_relu negative_slope in the reference module
BN_EPS = 1e-5
LANE = 128


def _rup(v, m):
    return ((v + m - 1) // m) * m


# ----------------------------- in-kernel math --------------------------------
def _lrelu(x):
    return jnp.maximum(x, NEG_SLOPE * x)


def _sigmoid(x):
    # stable: exponentiate only non-positive arguments; reciprocal on the EUP.
    ex = jnp.exp(-jnp.abs(x))
    pos = pl.reciprocal(1.0 + ex, approx=True)       # 1/(1+e^-|x|)
    return jnp.where(x >= 0, pos, ex * pos)


# ------------------------------ Pallas kernel --------------------------------
def build_kernel(enc_meta, lat_meta, dec_meta, out_meta, L, B, dz, d_out, out_w):
    """meta entries: (weight_row, fan_in, fan_out, bias_row) — static ints."""

    def kernel(x_ref, noise_ref, p_ref, out_ref):
        def layer(h, meta, act):
            r, fin, fout, br = meta
            w = p_ref[pl.ds(r, fin), pl.ds(0, fout)].astype(jnp.bfloat16)
            b = p_ref[pl.ds(br, 1), pl.ds(0, fout)]            # f32 (1, fout)
            y = jnp.dot(h.astype(jnp.bfloat16), w,
                        preferred_element_type=jnp.float32) + b
            if act == "lrelu":
                y = _lrelu(y)
            elif act == "sigmoid":
                y = _sigmoid(y)
            return y

        # ---- encoder trunk: (Linear + folded BN) -> leaky_relu
        h = x_ref[...]
        for m in enc_meta:
            h = layer(h, m, "lrelu")

        # ---- fused latent heads: lat = [mu_lat | logv_lat]
        lat = layer(h, lat_meta, "none")                       # (B, 2*dz)
        mu_lat = lat[:, 0:dz]
        logv_lat = lat[:, dz:2 * dz]
        std_lat = jnp.exp(0.5 * logv_lat)

        # ---- reparametrization trick, all L samples folded into the batch dim
        noise = noise_ref[...]                                 # (L*B, dz)
        a = noise * jnp.concatenate([std_lat] * L, axis=0) \
            + jnp.concatenate([mu_lat] * L, axis=0)

        # ---- decoder trunk
        for m in dec_meta:
            a = layer(a, m, "lrelu")

        # ---- fused output heads: o = sigmoid([mu | logv])    (L*B, 2*d_out)
        o = layer(a, out_meta, "sigmoid")

        # ---- mean over the L samples (row-block sum, sublane-aligned slices)
        acc = o[0:B, :]
        for l in range(1, L):
            acc = acc + o[l * B:(l + 1) * B, :]
        o_mean = acc * (1.0 / L)                               # (B, 2*d_out)
        mu_res = o_mean[:, 0:d_out]
        std_res = jnp.exp(0.5 * o_mean[:, d_out:2 * d_out])

        # ---- single packed output slab: 4 row-blocks of B rows each
        out_ref[...] = jnp.zeros((4 * B, out_w), jnp.float32)
        out_ref[pl.ds(0 * B, B), pl.ds(0, d_out)] = mu_res
        out_ref[pl.ds(1 * B, B), pl.ds(0, d_out)] = std_res
        out_ref[pl.ds(2 * B, B), pl.ds(0, dz)] = mu_lat
        out_ref[pl.ds(3 * B, B), pl.ds(0, dz)] = logv_lat

    return kernel


# --------------------------- host-side param prep ----------------------------
def init_raw_params(key, input_size, hidden_sizes):
    """Parameters mirroring the PyTorch module: Linear(weight ~ U[0,1], torch
    default bias init) + BatchNorm1d in eval mode (default stats:
    scale = 1/sqrt(1+eps), shift = 0)."""
    n = len(hidden_sizes)

    def linear(k, fin, fout):
        kw, kb = jax.random.split(k)
        w = jax.random.uniform(kw, (fin, fout), jnp.float32, 0.0, 1.0)
        bound = 1.0 / math.sqrt(fin)
        b = jax.random.uniform(kb, (1, fout), jnp.float32, -bound, bound)
        return w, b

    def bn(fout):
        scale = jnp.full((1, fout), 1.0 / math.sqrt(1.0 + BN_EPS), jnp.float32)
        shift = jnp.zeros((1, fout), jnp.float32)
        return scale, shift

    keys = jax.random.split(key, 2 * n + 2)
    ki = 0
    raw = {"enc": [], "dec": []}
    for i in range(n - 1):
        fin = input_size if i == 0 else hidden_sizes[i - 1]
        fout = hidden_sizes[i]
        w, b = linear(keys[ki], fin, fout); ki += 1
        raw["enc"].append((w, b) + bn(fout))
    fin = input_size if n == 1 else hidden_sizes[n - 2]
    fout = hidden_sizes[n - 1]
    w, b = linear(keys[ki], fin, fout); ki += 1
    raw["lat_mu"] = (w, b) + bn(fout)
    w, b = linear(keys[ki], fin, fout); ki += 1
    raw["lat_lv"] = (w, b) + bn(fout)
    inv = list(reversed(hidden_sizes))
    for i in range(n - 1):
        w, b = linear(keys[ki], inv[i], inv[i + 1]); ki += 1
        raw["dec"].append((w, b) + bn(inv[i + 1]))
    w, b = linear(keys[ki], inv[-1], input_size); ki += 1
    raw["out_mu"] = (w, b)
    w, b = linear(keys[ki], inv[-1], input_size); ki += 1
    raw["out_lv"] = (w, b)
    return raw


def pack_params(raw):
    """Fold BN into the Linears, fuse paired heads, and pack every weight and
    bias into one (rows, 128) f32 slab with sublane-aligned weight offsets."""
    def fold(w, b, s, o):
        return w * s, b * s + o

    layers = []
    for (w, b, s, o) in raw["enc"]:
        layers.append(fold(w, b, s, o))
    wm, bm, sm, om = raw["lat_mu"]
    wv, bv, sv, ov = raw["lat_lv"]
    fwm, fbm = fold(wm, bm, sm, om)
    fwv, fbv = fold(wv, bv, sv, ov)
    layers.append((jnp.concatenate([fwm, fwv], axis=1),
                   jnp.concatenate([fbm, fbv], axis=1)))
    for (w, b, s, o) in raw["dec"]:
        layers.append(fold(w, b, s, o))
    layers.append((jnp.concatenate([raw["out_mu"][0], raw["out_lv"][0]], axis=1),
                   jnp.concatenate([raw["out_mu"][1], raw["out_lv"][1]], axis=1)))

    row = 0
    w_rows = []
    for (w, _b) in layers:
        w_rows.append(row)
        row += _rup(w.shape[0], 8)
    bias_row0 = row
    total_rows = _rup(bias_row0 + len(layers), 8)

    slab = np.zeros((total_rows, LANE), np.float32)
    meta = []
    for idx, (w, b) in enumerate(layers):
        fin, fout = w.shape
        assert fout <= LANE, "layer width must fit in one 128-lane slab"
        r = w_rows[idx]
        br = bias_row0 + idx
        slab[r:r + fin, :fout] = np.asarray(w, np.float32)
        slab[br, :fout] = np.asarray(b, np.float32).reshape(-1)
        meta.append((r, fin, fout, br))
    return jnp.asarray(slab), tuple(meta)


# --------------------------------- wrapper ------------------------------------
def autoencoder_forward(x, noise, raw, hidden_sizes):
    B, d_in = x.shape
    L, Bn, dz = noise.shape
    assert Bn == B and dz == hidden_sizes[-1]
    n = len(hidden_sizes)

    slab, meta = pack_params(raw)
    enc_meta = meta[:n - 1]
    lat_meta = meta[n - 1]
    dec_meta = meta[n:2 * n - 1]
    out_meta = meta[2 * n - 1]

    noise2d = noise.reshape(L * B, dz)
    out_w = _rup(max(d_in, dz), LANE)       # lane-padded packed output width

    kernel = build_kernel(enc_meta, lat_meta, dec_meta, out_meta,
                          L, B, dz, d_in, out_w)

    def full_spec(shape):
        nd = len(shape)
        return pl.BlockSpec(shape, lambda i, _nd=nd: (0,) * _nd)

    # grid=(1,): single invocation, whole (tiny) problem lives in VMEM.
    # TODO(synk): for large B/L add a "parallel" batch grid axis so v7x's second
    #   TensorCore is used; unnecessary (and a no-op) at this toy size.
    packed = pl.pallas_call(
        kernel,
        out_shape=jax.ShapeDtypeStruct((4 * B, out_w), jnp.float32),
        grid=(1,),
        in_specs=[full_spec(x.shape), full_spec(noise2d.shape),
                  full_spec(slab.shape)],
        out_specs=full_spec((4 * B, out_w)),
        compiler_params=pltpu.CompilerParams(
            dimension_semantics=("arbitrary",),
            vmem_limit_bytes=32 * 1024 * 1024,
        ),
    )(x, noise2d, slab)

    mu_res = packed[0 * B:1 * B, :d_in]
    std_res = packed[1 * B:2 * B, :d_in]
    mu_lat = packed[2 * B:3 * B, :dz]
    logv_lat = packed[3 * B:4 * B, :dz]
    return mu_res, std_res, mu_lat, logv_lat


# ------------------------- pure-JAX reference (spec) ---------------------------
def _ref_dot(a, w):
    # match the kernel's bf16-operand / f32-accumulate matmuls
    return jnp.dot(a.astype(jnp.bfloat16), w.astype(jnp.bfloat16),
                   preferred_element_type=jnp.float32)


def reference_forward(x, noise, raw, L):
    lrelu = lambda v: jnp.maximum(v, NEG_SLOPE * v)
    h = x
    for (w, b, s, o) in raw["enc"]:
        h = lrelu((_ref_dot(h, w) + b) * s + o)
    wm, bm, sm, om = raw["lat_mu"]
    wv, bv, sv, ov = raw["lat_lv"]
    mu_lat = (_ref_dot(h, wm) + bm) * sm + om
    logv_lat = (_ref_dot(h, wv) + bv) * sv + ov
    std_lat = jnp.exp(0.5 * logv_lat)

    wom, bom = raw["out_mu"]
    wol, bol = raw["out_lv"]
    mu_acc = jnp.zeros_like(x)
    lv_acc = jnp.zeros_like(x)
    for l in range(L):
        a = noise[l] * std_lat + mu_lat           # reparametrization trick
        for (w, b, s, o) in raw["dec"]:
            a = lrelu((_ref_dot(a, w) + b) * s + o)
        mu_acc = mu_acc + jax.nn.sigmoid(_ref_dot(a, wom) + bom)
        lv_acc = lv_acc + jax.nn.sigmoid(_ref_dot(a, wol) + bol)
    mu_res = mu_acc / L
    logv_res = lv_acc / L
    return mu_res, jnp.exp(0.5 * logv_res), mu_lat, logv_lat


# ----------------------------------- main --------------------------------------
if __name__ == "__main__":
    INPUT_SIZE = 16
    HIDDEN_SIZES = [32, 16, 8]    # latent dim = 8
    Z_SAMPLES = 4                 # L
    BATCH = 8

    key = jax.random.PRNGKey(0)
    kx, kn, kp = jax.random.split(key, 3)

    x = jax.random.uniform(kx, (BATCH, INPUT_SIZE), jnp.float32, 0.0, 0.1)
    noise = jax.random.normal(kn, (Z_SAMPLES, BATCH, HIDDEN_SIZES[-1]), jnp.float32)
    raw = init_raw_params(kp, INPUT_SIZE, HIDDEN_SIZES)

    outs = autoencoder_forward(x, noise, raw, HIDDEN_SIZES)
    outs = jax.block_until_ready(outs)

    ref = reference_forward(x, noise, raw, Z_SAMPLES)
    for got, want in zip(outs, ref):
        g = np.asarray(got)
        w = np.asarray(want)
        assert np.all(np.isfinite(g))
        np.testing.assert_allclose(g, w, rtol=2e-2, atol=5e-3)

    print("KERNEL_OK")
</pallas_src>

<mosaic_0001>
module attributes {stable_mosaic.version = 11 : i64} {
  func.func @kernel(%arg0: i32, %arg1: memref<8x16xf32, #tpu.memory_space<vmem>>, %arg2: memref<32x8xf32, #tpu.memory_space<vmem>>, %arg3: memref<128x128xf32, #tpu.memory_space<vmem>>, %arg4: memref<32x128xf32, #tpu.memory_space<vmem>>) attributes {dimension_semantics = [#tpu.dimension_semantics<arbitrary>], iteration_bounds = array<i64: 1>, scalar_prefetch = 0 : i64, scratch_operands = 0 : i64, tpu.core_type = #tpu.core_type<tc>, window_params = [{pipeline_mode = #tpu.pipeline_mode<synchronous>, transform_indices = @transform_0, window_bounds = array<i64: 8, 16>}, {pipeline_mode = #tpu.pipeline_mode<synchronous>, transform_indices = @transform_1, window_bounds = array<i64: 32, 8>}, {pipeline_mode = #tpu.pipeline_mode<synchronous>, transform_indices = @transform_2, window_bounds = array<i64: 128, 128>}, {pipeline_mode = #tpu.pipeline_mode<synchronous>, transform_indices = @transform_3, window_bounds = array<i64: 32, 128>}]} {
    %c0 = arith.constant 0 : index
    %c0_0 = arith.constant 0 : index
    %0 = vector.load %arg1[%c0, %c0_0] : memref<8x16xf32, #tpu.memory_space<vmem>>, vector<8x16xf32>
    %c0_1 = arith.constant 0 : index
    %c0_2 = arith.constant 0 : index
    %1 = vector.load %arg3[%c0_1, %c0_2] : memref<128x128xf32, #tpu.memory_space<vmem>>, vector<16x32xf32>
    %2 = arith.truncf %1 : vector<16x32xf32> to vector<16x32xbf16>
    %c120 = arith.constant 120 : index
    %c0_3 = arith.constant 0 : index
    %3 = vector.load %arg3[%c120, %c0_3] : memref<128x128xf32, #tpu.memory_space<vmem>>, vector<1x32xf32>
    %4 = arith.truncf %0 : vector<8x16xf32> to vector<8x16xbf16>
    %cst = arith.constant dense<0.000000e+00> : vector<8x32xf32>
    %5 = tpu.matmul %4, %2, %cst {dimension_numbers = #tpu.dot_dimension_numbers<[1], [0], [0], [1], [0, 0, 1, 1], [], []>} : vector<8x16xbf16>, vector<16x32xbf16>, vector<8x32xf32> -> vector<8x32xf32>
    %6 = vector.broadcast %3 : vector<1x32xf32> to vector<8x32xf32>
    %7 = arith.addf %5, %6 : vector<8x32xf32>
    %cst_4 = arith.constant 0.00999999977 : f32
    %8 = vector.broadcast %cst_4 : f32 to vector<8x32xf32>
    %9 = arith.mulf %8, %7 : vector<8x32xf32>
    %10 = arith.maximumf %7, %9 : vector<8x32xf32>
    %c16 = arith.constant 16 : index
    %c0_5 = arith.constant 0 : index
    %11 = vector.load %arg3[%c16, %c0_5] : memref<128x128xf32, #tpu.memory_space<vmem>>, vector<32x16xf32>
    %12 = arith.truncf %11 : vector<32x16xf32> to vector<32x16xbf16>
    %c121 = arith.constant 121 : index
    %c0_6 = arith.constant 0 : index
    %13 = vector.load %arg3[%c121, %c0_6] : memref<128x128xf32, #tpu.memory_space<vmem>>, vector<1x16xf32>
    %14 = arith.truncf %10 : vector<8x32xf32> to vector<8x32xbf16>
    %cst_7 = arith.constant dense<0.000000e+00> : vector<8x16xf32>
    %15 = tpu.matmul %14, %12, %cst_7 {dimension_numbers = #tpu.dot_dimension_numbers<[1], [0], [0], [1], [0, 0, 1, 1], [], []>} : vector<8x32xbf16>, vector<32x16xbf16>, vector<8x16xf32> -> vector<8x16xf32>
    %16 = vector.broadcast %13 : vector<1x16xf32> to vector<8x16xf32>
    %17 = arith.addf %15, %16 : vector<8x16xf32>
    %cst_8 = arith.constant 0.00999999977 : f32
    %18 = vector.broadcast %cst_8 : f32 to vector<8x16xf32>
    %19 = arith.mulf %18, %17 : vector<8x16xf32>
    %20 = arith.maximumf %17, %19 : vector<8x16xf32>
    %c48 = arith.constant 48 : index
    %c0_9 = arith.constant 0 : index
    %21 = vector.load %arg3[%c48, %c0_9] : memref<128x128xf32, #tpu.memory_space<vmem>>, vector<16x16xf32>
    %22 = arith.truncf %21 : vector<16x16xf32> to vector<16x16xbf16>
    %c122 = arith.constant 122 : index
    %c0_10 = arith.constant 0 : index
    %23 = vector.load %arg3[%c122, %c0_10] : memref<128x128xf32, #tpu.memory_space<vmem>>, vector<1x16xf32>
    %24 = arith.truncf %20 : vector<8x16xf32> to vector<8x16xbf16>
    %cst_11 = arith.constant dense<0.000000e+00> : vector<8x16xf32>
    %25 = tpu.matmul %24, %22, %cst_11 {dimension_numbers = #tpu.dot_dimension_numbers<[1], [0], [0], [1], [0, 0, 1, 1], [], []>} : vector<8x16xbf16>, vector<16x16xbf16>, vector<8x16xf32> -> vector<8x16xf32>
    %26 = vector.broadcast %23 : vector<1x16xf32> to vector<8x16xf32>
    %27 = arith.addf %25, %26 : vector<8x16xf32>
    %28 = vector.extract_strided_slice %27 {offsets = [0, 0], sizes = [8, 8], strides = [1, 1]} : vector<8x16xf32> to vector<8x8xf32>
    %29 = vector.extract_strided_slice %27 {offsets = [0, 8], sizes = [8, 8], strides = [1, 1]} : vector<8x16xf32> to vector<8x8xf32>
    %cst_12 = arith.constant 5.000000e-01 : f32
    %30 = vector.broadcast %cst_12 : f32 to vector<8x8xf32>
    %31 = arith.mulf %30, %29 : vector<8x8xf32>
    %32 = math.exp %31 : vector<8x8xf32>
    %c0_13 = arith.constant 0 : index
    %c0_14 = arith.constant 0 : index
    %33 = vector.load %arg2[%c0_13, %c0_14] : memref<32x8xf32, #tpu.memory_space<vmem>>, vector<32x8xf32>
    %34 = tpu.concatenate %32, %32, %32, %32 in 0 : vector<8x8xf32>, vector<8x8xf32>, vector<8x8xf32>, vector<8x8xf32> -> vector<32x8xf32>
    %35 = arith.mulf %33, %34 : vector<32x8xf32>
    %36 = tpu.concatenate %28, %28, %28, %28 in 0 : vector<8x8xf32>, vector<8x8xf32>, vector<8x8xf32>, vector<8x8xf32> -> vector<32x8xf32>
    %37 = arith.addf %35, %36 : vector<32x8xf32>
    %c64 = arith.constant 64 : index
    %c0_15 = arith.constant 0 : index
    %38 = vector.load %arg3[%c64, %c0_15] : memref<128x128xf32, #tpu.memory_space<vmem>>, vector<8x16xf32>
    %39 = arith.truncf %38 : vector<8x16xf32> to vector<8x16xbf16>
    %c123 = arith.constant 123 : index
    %c0_16 = arith.constant 0 : index
    %40 = vector.load %arg3[%c123, %c0_16] : memref<128x128xf32, #tpu.memory_space<vmem>>, vector<1x16xf32>
    %41 = arith.truncf %37 : vector<32x8xf32> to vector<32x8xbf16>
    %cst_17 = arith.constant dense<0.000000e+00> : vector<32x16xf32>
    %42 = tpu.matmul %41, %39, %cst_17 {dimension_numbers = #tpu.dot_dimension_numbers<[1], [0], [0], [1], [0, 0, 1, 1], [], []>} : vector<32x8xbf16>, vector<8x16xbf16>, vector<32x16xf32> -> vector<32x16xf32>
    %43 = vector.broadcast %40 : vector<1x16xf32> to vector<32x16xf32>
    %44 = arith.addf %42, %43 : vector<32x16xf32>
    %cst_18 = arith.constant 0.00999999977 : f32
    %45 = vector.broadcast %cst_18 : f32 to vector<32x16xf32>
    %46 = arith.mulf %45, %44 : vector<32x16xf32>
    %47 = arith.maximumf %44, %46 : vector<32x16xf32>
    %c72 = arith.constant 72 : index
    %c0_19 = arith.constant 0 : index
    %48 = vector.load %arg3[%c72, %c0_19] : memref<128x128xf32, #tpu.memory_space<vmem>>, vector<16x32xf32>
    %49 = arith.truncf %48 : vector<16x32xf32> to vector<16x32xbf16>
    %c124 = arith.constant 124 : index
    %c0_20 = arith.constant 0 : index
    %50 = vector.load %arg3[%c124, %c0_20] : memref<128x128xf32, #tpu.memory_space<vmem>>, vector<1x32xf32>
    %51 = arith.truncf %47 : vector<32x16xf32> to vector<32x16xbf16>
    %cst_21 = arith.constant dense<0.000000e+00> : vector<32x32xf32>
    %52 = tpu.matmul %51, %49, %cst_21 {dimension_numbers = #tpu.dot_dimension_numbers<[1], [0], [0], [1], [0, 0, 1, 1], [], []>} : vector<32x16xbf16>, vector<16x32xbf16>, vector<32x32xf32> -> vector<32x32xf32>
    %53 = vector.broadcast %50 : vector<1x32xf32> to vector<32x32xf32>
    %54 = arith.addf %52, %53 : vector<32x32xf32>
    %cst_22 = arith.constant 0.00999999977 : f32
    %55 = vector.broadcast %cst_22 : f32 to vector<32x32xf32>
    %56 = arith.mulf %55, %54 : vector<32x32xf32>
    %57 = arith.maximumf %54, %56 : vector<32x32xf32>
    %c88 = arith.constant 88 : index
    %c0_23 = arith.constant 0 : index
    %58 = vector.load %arg3[%c88, %c0_23] : memref<128x128xf32, #tpu.memory_space<vmem>>, vector<32x32xf32>
    %59 = arith.truncf %58 : vector<32x32xf32> to vector<32x32xbf16>
    %c125 = arith.constant 125 : index
    %c0_24 = arith.constant 0 : index
    %60 = vector.load %arg3[%c125, %c0_24] : memref<128x128xf32, #tpu.memory_space<vmem>>, vector<1x32xf32>
    %61 = arith.truncf %57 : vector<32x32xf32> to vector<32x32xbf16>
    %cst_25 = arith.constant dense<0.000000e+00> : vector<32x32xf32>
    %62 = tpu.matmul %61, %59, %cst_25 {dimension_numbers = #tpu.dot_dimension_numbers<[1], [0], [0], [1], [0, 0, 1, 1], [], []>} : vector<32x32xbf16>, vector<32x32xbf16>, vector<32x32xf32> -> vector<32x32xf32>
    %63 = vector.broadcast %60 : vector<1x32xf32> to vector<32x32xf32>
    %64 = arith.addf %62, %63 : vector<32x32xf32>
    %65 = math.absf %64 : vector<32x32xf32>
    %cst_26 = arith.constant 0.000000e+00 : f32
    %66 = vector.broadcast %cst_26 : f32 to vector<32x32xf32>
    %67 = arith.subf %66, %65 : vector<32x32xf32>
    %68 = math.exp %67 : vector<32x32xf32>
    %cst_27 = arith.constant 1.000000e+00 : f32
    %69 = vector.broadcast %cst_27 : f32 to vector<32x32xf32>
    %70 = arith.addf %69, %68 : vector<32x32xf32>
    %71 = tpu.reciprocal %70 {approx = true} : vector<32x32xf32> -> vector<32x32xf32>
    %cst_28 = arith.constant 0.000000e+00 : f32
    %72 = vector.broadcast %cst_28 : f32 to vector<32x32xf32>
    %73 = arith.cmpf oge, %64, %72 : vector<32x32xf32>
    %74 = arith.mulf %68, %71 : vector<32x32xf32>
    %75 = arith.select %73, %71, %74 : vector<32x32xi1>, vector<32x32xf32>
    %76 = vector.extract_strided_slice %75 {offsets = [0, 0], sizes = [8, 32], strides = [1, 1]} : vector<32x32xf32> to vector<8x32xf32>
    %77 = vector.extract_strided_slice %75 {offsets = [8, 0], sizes = [8, 32], strides = [1, 1]} : vector<32x32xf32> to vector<8x32xf32>
    %78 = arith.addf %76, %77 : vector<8x32xf32>
    %79 = vector.extract_strided_slice %75 {offsets = [16, 0], sizes = [8, 32], strides = [1, 1]} : vector<32x32xf32> to vector<8x32xf32>
    %80 = arith.addf %78, %79 : vector<8x32xf32>
    %81 = vector.extract_strided_slice %75 {offsets = [24, 0], sizes = [8, 32], strides = [1, 1]} : vector<32x32xf32> to vector<8x32xf32>
    %82 = arith.addf %80, %81 : vector<8x32xf32>
    %cst_29 = arith.constant 2.500000e-01 : f32
    %83 = vector.broadcast %cst_29 : f32 to vector<8x32xf32>
    %84 = arith.mulf %82, %83 : vector<8x32xf32>
    %85 = vector.extract_strided_slice %84 {offsets = [0, 0], sizes = [8, 16], strides = [1, 1]} : vector<8x32xf32> to vector<8x16xf32>
    %86 = vector.extract_strided_slice %84 {offsets = [0, 16], sizes = [8, 16], strides = [1, 1]} : vector<8x32xf32> to vector<8x16xf32>
    %cst_30 = arith.constant 5.000000e-01 : f32
    %87 = vector.broadcast %cst_30 : f32 to vector<8x16xf32>
    %88 = arith.mulf %87, %86 : vector<8x16xf32>
    %89 = math.exp %88 : vector<8x16xf32>
    %cst_31 = arith.constant 0.000000e+00 : f32
    %90 = vector.broadcast %cst_31 : f32 to vector<32x128xf32>
    %c0_32 = arith.constant 0 : index
    %c0_33 = arith.constant 0 : index
    %91 = vector.load %arg4[%c0_32, %c0_33] : memref<32x128xf32, #tpu.memory_space<vmem>>, vector<32x128xf32>
    tpu.vector_store %arg4[%c0_32, %c0_33], %90 {strides = array<i32>} : memref<32x128xf32, #tpu.memory_space<vmem>>, vector<32x128xf32>,
    %c0_34 = arith.constant 0 : index
    %c0_35 = arith.constant 0 : index
    %92 = vector.load %arg4[%c0_34, %c0_35] : memref<32x128xf32, #tpu.memory_space<vmem>>, vector<8x16xf32>
    tpu.vector_store %arg4[%c0_34, %c0_35], %85 {strides = array<i32>} : memref<32x128xf32, #tpu.memory_space<vmem>>, vector<8x16xf32>,
    %c8 = arith.constant 8 : index
    %c0_36 = arith.constant 0 : index
    %93 = vector.load %arg4[%c8, %c0_36] : memref<32x128xf32, #tpu.memory_space<vmem>>, vector<8x16xf32>
    tpu.vector_store %arg4[%c8, %c0_36], %89 {strides = array<i32>} : memref<32x128xf32, #tpu.memory_space<vmem>>, vector<8x16xf32>,
    %c16_37 = arith.constant 16 : index
    %c0_38 = arith.constant 0 : index
    %94 = vector.load %arg4[%c16_37, %c0_38] : memref<32x128xf32, #tpu.memory_space<vmem>>, vector<8x8xf32>
    tpu.vector_store %arg4[%c16_37, %c0_38], %28 {strides = array<i32>} : memref<32x128xf32, #tpu.memory_space<vmem>>, vector<8x8xf32>,
    %c24 = arith.constant 24 : index
    %c0_39 = arith.constant 0 : index
    %95 = vector.load %arg4[%c24, %c0_39] : memref<32x128xf32, #tpu.memory_space<vmem>>, vector<8x8xf32>
    tpu.vector_store %arg4[%c24, %c0_39], %29 {strides = array<i32>} : memref<32x128xf32, #tpu.memory_space<vmem>>, vector<8x8xf32>,
    return
  }
  func.func @transform_0(%arg0: i32) -> (i32, i32) {
    %c0_i32 = arith.constant 0 : i32
    %c0_i32_0 = arith.constant 0 : i32
    %c0_i32_1 = arith.constant 0 : i32
    return %c0_i32, %c0_i32_0 : i32, i32
  }
  func.func @transform_1(%arg0: i32) -> (i32, i32) {
    %c0_i32 = arith.constant 0 : i32
    %c0_i32_0 = arith.constant 0 : i32
    %c0_i32_1 = arith.constant 0 : i32
    return %c0_i32, %c0_i32_0 : i32, i32
  }
  func.func @transform_2(%arg0: i32) -> (i32, i32) {
    %c0_i32 = arith.constant 0 : i32
    %c0_i32_0 = arith.constant 0 : i32
    %c0_i32_1 = arith.constant 0 : i32
    return %c0_i32, %c0_i32_0 : i32, i32
  }
  func.func @transform_3(%arg0: i32) -> (i32, i32) {
    %c0_i32 = arith.constant 0 : i32
    %c0_i32_0 = arith.constant 0 : i32
    %c0_i32_1 = arith.constant 0 : i32
    return %c0_i32, %c0_i32_0 : i32, i32
  }
}

</mosaic_0001>

<bundles_post_ra>
// kernel: tpu_custom_call.1
= control target key start
LH: loop header
LB: loop body
LE: loop exit
PB: predicated region body
PF: predicated region fallthrough
CT: control target
= control target key end

     0   :  { %8 = vsyncpa [#allocation3], 0  ;;  %s722_s0 = inlined_call_operand.vmem [shape: f32[8,16], index: 0, kind: input, shape index: {}]   ;;  %s723_s1 = inlined_call_operand.vmem [shape: f32[32,8], index: 1, kind: input, shape index: {}]   ;;  %s724_s2 = inlined_call_operand.hbm [shape: f32[128,128], index: 2, kind: input, shape index: {}]   ;;  %s725_s3 = inlined_call_operand.hbm [shape: f32[32,128], index: 3, kind: output, shape index: {}]  }
   0x1   :  { %9 = vsyncpa [#allocation4], 0  ;;  %s654_s12 = smov [#allocation2]  }
   0x2   :  { %s19_s13 = sshll.u32 %s654_s12, 4  ;;  %s20_s13 = int_to_ptr.vmem [resolvable:$true] %s19_s13 }
   0x3   :  { %s618_s14 = scalar_lea.vmem %s20_s13, 2048  ;;  %p623_p1 = scmp.lt.s32.totalorder %s20_s13, %s20_s13 }
   0x4   :  { %p619_p0 = scmp.ne.s32.totalorder %s20_s13, %s618_s14  ;;  %p624_p2 = scmp.lt.s32.totalorder %s618_s14, %s618_s14 }
   0x6   :  { %p625_p3 = por %p624_p2, %p623_p1 }
   0x8   :  { %p626_p4 = pnand %p625_p3, %p619_p0 }
   0xa   :  { %629 = shalt.err (!%p626_p4)
}
   0xb   :  { %s655_s15 = smov 128   ;;  %s656_s16 = smov 8  }
   0xc   :  { %25 = dma.hbm_to_vmem [thread:$0]  %s724_s2, 2048, %s20_s13, [#allocation3], %s655_s15, %s655_s15, %s656_s16  }
   0xd   :  { %650 = dma.done.wait [#allocation3], 2048  }
   0xe   :  { %651 = vsyncadd [#allocation3], 4294965248  ;;  %v657_v0 = vmov 0.0   ;;  %vm658_vm0 = vmmov 0   ;;  %v31_v1 = vld [vmem:[#allocation2] sm:$0xff]  ;;  %v32_v2 = vld [vmem:[#allocation2 + $0x8] sm:$0xff] }
   0xf   :  { %541 = vmatprep.subr.bf16.mxu0 %v657_v0  ;;  %476 = vst [vmem:[#allocation5] sm:$0xff] %v657_v0  ;;  %477 = vst [vmem:[#allocation5 + $0x8] sm:$0xff] %v657_v0  ;;  %543 = vmatprep.mubr.msk.bf16.mxu0 %vm658_vm0, %v657_v0  ;;  %v30_v3 = vld [vmem:[%s722_s0] sm:$0xff]  ;;  %v33_v4 = vpack.c.bf16 %v32_v2, %v31_v1  ;;  %vm40_vm1 = vcmask 130048   ;;  %v89_v7 = vld [vmem:[#allocation2 + $0x28] sm:$0xff]  ;;  %vm98_vm2 = vcmask 261120  }
  0x10   :  { %478 = vst [vmem:[#allocation5 + $0x10] sm:$0xff] %v657_v0  ;;  %479 = vst [vmem:[#allocation5 + $0x18] sm:$0xff] %v657_v0  ;;  %547 = vmatprep.subr.bf16.mxu1 %v657_v0  ;;  %551 = vmatprep.mubr.msk.bf16.mxu1 %vm658_vm0, %v657_v0  ;;  %v35_v5 = vpack.c.bf16 %v30_v3, %v30_v3  ;;  %v88_v6 = vld [vmem:[#allocation2 + $0x20] sm:$0xff]  ;;  %v86_v9 = vld [vmem:[#allocation2 + $0x10] sm:$0xff]  ;;  %vm231_vm3 = vcmask 1043456   ;;  %vm224_vm4 = vcmask 64512  }
  0x11   :  { %542 = vmatpush3.bf16.msra.mxu0 %v33_v4  ;;  %v91_v8 = vpack.c.bf16 %v89_v7, %v88_v6  ;;  %v87_v10 = vld [vmem:[#allocation2 + $0x18] sm:$0xff]  ;;  %v144_v21 = vld [vmem:[#allocation2 + $0x30] sm:$0xff]  ;;  %v215_v33 = vld [vmem:[#allocation2 + $0x40] sm:$0xff]  ;;  %s659_s0 = smov 120   ;;  %s661_s28 = smov [#allocation5]  }
  0x12   :  { %555 = vmatprep.subr.bf16.mxu0 %v657_v0  ;;  %v90_v11 = vpack.c.bf16 %v87_v10, %v86_v9  ;;  %v509_v12 = vld [vmem:[#allocation2 + $0x78] ss:$0 sm:$0xff]  ;;  %v511_v24 = vld [vmem:[#allocation2 + $0x79] ss:$0 sm:$0xff]  ;;  %v216_v34 = vpack.c.bf16 %v215_v33, %v215_v33  ;;  %v513_v36 = vld [vmem:[#allocation2 + $0x7a] ss:$0 sm:$0xff] }
  0x13   :  { %548 = vmatpush3.bf16.msra.mxu1 %v91_v8  ;;  %v145_v22 = vld [vmem:[#allocation2 + $0x38] sm:$0xff]  ;;  %v199_v46 = vld [vmem:[%s723_s1] sm:$0xff]  ;;  %v200_v47 = vld [vmem:[%s723_s1 + $0x8] sm:$0xff]  ;;  %s497_s29 = sshll.u32 %s661_s28, 4  ;;  %s498_s29 = int_to_ptr.vmem [resolvable:$true] %s497_s29 }
  0x14   :  { %544 = vmatmul.mubr.msk.bf16.vlgmr.msra.gmra.mxu0 %vm40_vm1, %v35_v5  ;;  %549 = vmatprep.subr.bf16.mxu1 %v657_v0  ;;  %v146_v23 = vpack.c.bf16 %v145_v22, %v144_v21  ;;  %v233_v35 = vsel %vm231_vm3, %v216_v34, 0  ;;  %v201_v48 = vld [vmem:[%s723_s1 + $0x10] sm:$0xff]  ;;  %v202_v49 = vld [vmem:[%s723_s1 + $0x18] sm:$0xff]  ;;  %v292_v61 = vld [vmem:[#allocation2 + $0x48] sm:$0xff]  ;;  %s660_s1 = smov 112   ;;  %s630_s30 = scalar_lea.vmem %s498_s29, 512 }
  0x15   :  { %557 = vmatprep.mubr.msk.bf16.mxu0 %vm658_vm0, %v657_v0  ;;  %v293_v62 = vld [vmem:[#allocation2 + $0x50] sm:$0xff]  ;;  %v515_v1 = vld [vmem:[#allocation2 + $0x7b] ss:$0 sm:$0xff]  ;;  %p631_p5 = scmp.ne.s32.totalorder %s498_s29, %s630_s30  ;;  %p635_p6 = scmp.lt.s32.totalorder %s498_s29, %s498_s29 }
  0x16   :  { %556 = vmatpush3.bf16.msra.mxu0 %v146_v23  ;;  %v294_v63 = vpack.c.bf16 %v293_v62, %v292_v61  ;;  %v365_v22 = vld [vmem:[#allocation2 + $0x58] sm:$0xff]  ;;  %v366_v23 = vld [vmem:[#allocation2 + $0x60] sm:$0xff]  ;;  %p636_p7 = scmp.lt.s32.totalorder %s630_s30, %s630_s30 }
  0x17   :  { %550 = vmatpush3.bf16.msra.mxu1 %v90_v11 }
  0x18   :  { %581 = vmatprep.subr.msk.bf16.mxu1 %vm231_vm3, %v216_v34  ;;  %567 = vmatprep.subr.bf16.mxu0 %v294_v63  ;;  %p637_p8 = por %p636_p7, %p635_p6 }
  0x1a   :  { %p638_p9 = pnand %p637_p8, %p631_p5 }
  0xd4   :  { %v78_v13 = vpop.f32.mrf.mxu0 }
  0xd5   :  { %v79_v14 = vadd.f32 %v509_v12, %v78_v13 }
  0xd6   :  { %v545_v15 = vpop.f32.mrf.mxu0 }
  0xd7   :  { %v84_v16 = vmul.f32 0.01, %v79_v14 }
  0xd8   :  { %v81_v17 = vpop.f32.mrf.mxu0 }
  0xd9   :  { %v85_v18 = vmax.f32 %v79_v14, %v84_v16 }
  0xda   :  { %v546_v19 = vpop.f32.mrf.mxu0 }
  0xdb   :  { %v93_v20 = vpack.c.bf16 %v85_v18, %v85_v18  ;;  %v367_v19 = vld [vmem:[#allocation2 + $0x68] sm:$0xff] }
  0xdd   :  { %552 = vmatmul.mubr.msk.bf16.vlgmr.msra.gmra.mxu1 %vm98_vm2, %v93_v20  ;;  %v368_v20 = vld [vmem:[#allocation2 + $0x70] sm:$0xff] }
  0xde   :  { %562 = vmatpush3.bf16.msra.mxu1 %v233_v35  ;;  %v370_v21 = vpack.c.bf16 %v368_v20, %v367_v19 }
  0xe0   :  { %573 = vmatprep.subr.bf16.mxu1 %v370_v21 }
 0x19d   :  { %v136_v25 = vpop.f32.mrf.mxu1 }
 0x19e   :  { %v137_v26 = vadd.f32 %v511_v24, %v136_v25  ;;  %v369_v24 = vpack.c.bf16 %v366_v23, %v365_v22 }
 0x19f   :  { %v553_v27 = vpop.f32.mrf.mxu1 }
 0x1a0   :  { %v142_v28 = vmul.f32 0.01, %v137_v26 }
 0x1a1   :  { %v139_v29 = vpop.f32.mrf.mxu1 }
 0x1a2   :  { %v143_v30 = vmax.f32 %v137_v26, %v142_v28  ;;  %v518_v26 = vld [vmem:[#allocation2 + $0x7c] ss:$0 sm:$0xff] }
 0x1a3   :  { %v554_v31 = vpop.f32.mrf.mxu1 }
 0x1a4   :  { %v148_v32 = vpack.c.bf16 %v143_v30, %v143_v30 }
 0x1a6   :  { %558 = vmatmul.mubr.msk.bf16.vlgmr.msra.gmra.mxu0 %vm40_vm1, %v148_v32 }
 0x1a7   :  { %568 = vmatpush3.bf16.msra.mxu0 %v294_v63 }
 0x266   :  { %v190_v37 = vpop.f32.mrf.mxu0 }
 0x267   :  { %v191_v38 = vadd.f32 %v513_v36, %v190_v37 }
 0x268   :  { %v559_v39 = vpop.f32.mrf.mxu0 }
 0x269   :  { %488 = vrot.lane.b32.xlu1 %v191_v38, %s659_s0  ;;  %v196_v40 = vmul.f32 0.5, %v191_v38  ;;  %486 = vst.msk [vmem:[#allocation5 + $0x10] sm:$0xff] %vm224_vm4, %v191_v38 }
 0x26a   :  { %v193_v41 = vpop.f32.mrf.mxu0 }
 0x26b   :  { %v197_v42 = vmul.f32 1.442695, %v196_v40 }
 0x26c   :  { %v560_v43 = vpop.f32.mrf.mxu0 }
 0x26d   :  { %590 = vpow2.f32 %v197_v42 }
 0x27a   :  { %v591_v44 = vpop.eup %590 }
 0x27b   :  { %204 = vrot.lane.b32.xlu0 %v591_v44, %s659_s0  ;;  %v521_v44 = vld [vmem:[#allocation2 + $0x7d] ss:$0 sm:$0xff] }
 0x2db   :  { %v489_v45 = vpop.permute.xlu1 %488 }
 0x2dc   :  { %491 = vst.msk [vmem:[#allocation5 + $0x18] sm:$0xff] %vm224_vm4, %v489_v45 }
 0x2ed   :  { %v205_v50 = vpop.permute.xlu0 %204 }
 0x2ee   :  { %v207_v51 = vmul.f32 %v205_v50, %v199_v46  ;;  %v208_v52 = vmul.f32 %v205_v50, %v200_v47  ;;  %v209_v53 = vmul.f32 %v205_v50, %v201_v48  ;;  %v210_v54 = vmul.f32 %v205_v50, %v202_v49 }
 0x2f0   :  { %v211_v55 = vadd.f32 %v207_v51, %v191_v38  ;;  %v212_v56 = vadd.f32 %v208_v52, %v191_v38  ;;  %v213_v57 = vadd.f32 %v209_v53, %v191_v38  ;;  %v214_v58 = vadd.f32 %v210_v54, %v191_v38 }
 0x2f2   :  { %v219_v59 = vpack.c.bf16 %v214_v58, %v213_v57  ;;  %v218_v60 = vpack.c.bf16 %v212_v56, %v211_v55 }
 0x2f4   :  { %563 = vmatprep.mubr.msk.bf16.mxu1 %vm224_vm4, %v218_v60 }
 0x2f5   :  { %564 = vmatmul.mubr.msk.bf16.vlgmr.msra.gmra.mxu1 %vm224_vm4, %v219_v59 }
 0x2f6   :  { %574 = vmatpush3.bf16.msra.mxu1 %v370_v21 }
 0x2f7   :  { %575 = vmatprep.subr.bf16.mxu1 %v369_v24 }
 0x2fa   :  { %576 = vmatpush3.bf16.msra.mxu1 %v369_v24 }
 0x3b5   :  { %v565_v0 = vpop.f32.mrf.mxu1 }
 0x3b6   :  { %v278_v4 = vadd.f32 %v565_v0, %v515_v1 }
 0x3b7   :  { %v269_v2 = vpop.f32.mrf.mxu1 }
 0x3b8   :  { %v270_v3 = vadd.f32 %v515_v1, %v269_v2  ;;  %v286_v11 = vmul.f32 0.01, %v278_v4 }
 0x3b9   :  { %v566_v5 = vpop.f32.mrf.mxu1 }
 0x3ba   :  { %v281_v6 = vadd.f32 %v566_v5, %v515_v1  ;;  %v284_v8 = vmul.f32 0.01, %v270_v3  ;;  %v290_v16 = vmax.f32 %v278_v4, %v286_v11 }
 0x3bb   :  { %v272_v7 = vpop.f32.mrf.mxu1 }
 0x3bc   :  { %v287_v9 = vmul.f32 0.01, %v281_v6  ;;  %v273_v10 = vadd.f32 %v515_v1, %v272_v7  ;;  %v288_v14 = vmax.f32 %v270_v3, %v284_v8 }
 0x3be   :  { %v285_v12 = vmul.f32 0.01, %v273_v10  ;;  %v291_v13 = vmax.f32 %v281_v6, %v287_v9 }
 0x3c0   :  { %v289_v15 = vmax.f32 %v273_v10, %v285_v12  ;;  %v297_v18 = vpack.c.bf16 %v291_v13, %v290_v16 }
 0x3c2   :  { %v296_v17 = vpack.c.bf16 %v289_v15, %v288_v14 }
 0x3c4   :  { %569 = vmatprep.mubr.msk.bf16.mxu0 %vm40_vm1, %v296_v17 }
 0x3c5   :  { %570 = vmatmul.mubr.msk.bf16.vlgmr.msra.gmra.mxu0 %vm40_vm1, %v297_v18 }
 0x485   :  { %v571_v25 = vpop.f32.mrf.mxu0 }
 0x486   :  { %v351_v29 = vadd.f32 %v571_v25, %v518_v26 }
 0x487   :  { %v342_v27 = vpop.f32.mrf.mxu0 }
 0x488   :  { %v343_v28 = vadd.f32 %v518_v26, %v342_v27  ;;  %v359_v36 = vmul.f32 0.01, %v351_v29 }
 0x489   :  { %v572_v30 = vpop.f32.mrf.mxu0 }
 0x48a   :  { %v354_v31 = vadd.f32 %v572_v30, %v518_v26  ;;  %v357_v33 = vmul.f32 0.01, %v343_v28  ;;  %v363_v41 = vmax.f32 %v351_v29, %v359_v36 }
 0x48b   :  { %v345_v32 = vpop.f32.mrf.mxu0 }
 0x48c   :  { %v360_v34 = vmul.f32 0.01, %v354_v31  ;;  %v346_v35 = vadd.f32 %v518_v26, %v345_v32  ;;  %v361_v39 = vmax.f32 %v343_v28, %v357_v33 }
 0x48e   :  { %v358_v37 = vmul.f32 0.01, %v346_v35  ;;  %v364_v38 = vmax.f32 %v354_v31, %v360_v34 }
 0x490   :  { %v362_v40 = vmax.f32 %v346_v35, %v358_v37  ;;  %v373_v43 = vpack.c.bf16 %v364_v38, %v363_v41 }
 0x492   :  { %v372_v42 = vpack.c.bf16 %v362_v40, %v361_v39 }
 0x494   :  { %577 = vmatprep.mubr.msk.bf16.mxu1 %vm98_vm2, %v372_v42 }
 0x495   :  { %578 = vmatmul.mubr.msk.bf16.vlgmr.msra.gmra.mxu1 %vm98_vm2, %v373_v43 }
 0x555   :  { %v579_v45 = vpop.f32.mrf.mxu1 }
 0x556   :  { %v427_v46 = vadd.f32 %v579_v45, %v521_v44 }
 0x557   :  { %v418_v47 = vpop.f32.mrf.mxu1 }
 0x558   :  { %v435_v48 = vand.u32 2147483647, %v427_v46  ;;  %v419_v49 = vadd.f32 %v521_v44, %v418_v47  ;;  %vm459_vm7 = vcmp.ge.f32.partialorder %v427_v46, 0.0 }
 0x559   :  { %v580_v50 = vpop.f32.mrf.mxu1 }
 0x55a   :  { %v439_v51 = vsub.f32 0.0, %v435_v48  ;;  %v433_v52 = vand.u32 2147483647, %v419_v49  ;;  %v430_v53 = vadd.f32 %v580_v50, %v521_v44  ;;  %vm457_vm5 = vcmp.ge.f32.partialorder %v419_v49, 0.0 }
 0x55b   :  { %v421_v54 = vpop.f32.mrf.mxu1 }
 0x55c   :  { %v445_v55 = vmul.f32 1.442695, %v439_v51  ;;  %v437_v56 = vsub.f32 0.0, %v433_v52  ;;  %v436_v57 = vand.u32 2147483647, %v430_v53  ;;  %v422_v58 = vadd.f32 %v521_v44, %v421_v54 }
 0x55d   :  { %vm460_vm8 = vcmp.ge.f32.partialorder %v430_v53, 0.0 }
 0x55e   :  { %v441_v59 = vmul.f32 1.442695, %v437_v56  ;;  %v440_v60 = vsub.f32 0.0, %v436_v57  ;;  %592 = vpow2.f32 %v445_v55  ;;  %v434_v61 = vand.u32 2147483647, %v422_v58 }
 0x55f   :  { %vm458_vm6 = vcmp.ge.f32.partialorder %v422_v58, 0.0 }
 0x560   :  { %594 = vpow2.f32 %v441_v59  ;;  %v447_v62 = vmul.f32 1.442695, %v440_v60  ;;  %v438_v63 = vsub.f32 0.0, %v434_v61 }
 0x562   :  { %596 = vpow2.f32 %v447_v62  ;;  %v443_v0 = vmul.f32 1.442695, %v438_v63 }
 0x564   :  { %598 = vpow2.f32 %v443_v0 }
 0x56b   :  { %v593_v1 = vpop.eup %592 }
 0x56c   :  { %v451_v5 = vadd.f32 1.0, %v593_v1 }
 0x56d   :  { %v595_v2 = vpop.eup %594 }
 0x56e   :  { %v449_v3 = vadd.f32 1.0, %v595_v2 }
 0x56f   :  { %v597_v4 = vpop.eup %596 }
 0x570   :  { %v452_v6 = vadd.f32 1.0, %v597_v4  ;;  %600 = vrcp.f32 %v449_v3 }
 0x571   :  { %v599_v7 = vpop.eup %598  ;;  %602 = vrcp.f32 %v451_v5 }
 0x572   :  { %v450_v8 = vadd.f32 1.0, %v599_v7  ;;  %604 = vrcp.f32 %v452_v6 }
 0x574   :  { %606 = vrcp.f32 %v450_v8 }
 0x57d   :  { %v601_v9 = vpop.eup %600 }
 0x57e   :  { %v603_v10 = vpop.eup %602  ;;  %v461_v12 = vmul.f32 %v601_v9, %v595_v2 }
 0x57f   :  { %v605_v11 = vpop.eup %604  ;;  %v463_v14 = vmul.f32 %v603_v10, %v593_v1 }
 0x580   :  { %v465_v16 = vsel %vm457_vm5, %v601_v9, %v461_v12  ;;  %v464_v17 = vmul.f32 %v605_v11, %v597_v4 }
 0x581   :  { %v607_v13 = vpop.eup %606  ;;  %v467_v20 = vsel %vm459_vm7, %v603_v10, %v463_v14 }
 0x582   :  { %v462_v15 = vmul.f32 %v607_v13, %v599_v7  ;;  %v468_v22 = vsel %vm460_vm8, %v605_v11, %v464_v17 }
 0x584   :  { %v466_v18 = vsel %vm458_vm6, %v607_v13, %v462_v15 }
 0x585   :  { %v469_v19 = vadd.f32 %v466_v18, %v465_v16 }
 0x587   :  { %v470_v21 = vadd.f32 %v469_v19, %v467_v20 }
 0x589   :  { %v471_v23 = vadd.f32 %v470_v21, %v468_v22 }
 0x58b   :  { %v472_v24 = vmul.f32 0.25, %v471_v23 }
 0x58d   :  { %v473_v25 = vmul.f32 0.5, %v472_v24  ;;  %480 = vst.msk [vmem:[#allocation5] sm:$0xff] %vm40_vm1, %v472_v24 }
 0x58f   :  { %v474_v26 = vmul.f32 1.442695, %v473_v25 }
 0x591   :  { %608 = vpow2.f32 %v474_v26 }
 0x59e   :  { %v609_v27 = vpop.eup %608 }
 0x59f   :  { %482 = vrot.lane.b32.xlu0 %v609_v27, %s660_s1 }
 0x611   :  { %v483_v28 = vpop.permute.xlu0 %482 }
 0x612   :  { %485 = vst.msk [vmem:[#allocation5 + $0x8] sm:$0xff] %vm40_vm1, %v483_v28 }
 0x613   :  { %641 = shalt.err (!%p638_p9)
}
 0x614   :  { %503 = dma.vmem_to_hbm [thread:$0]  %s498_s29, 512, %s725_s3, [#allocation4], %s655_s15, %s655_s15, %s656_s16  }
 0x615   :  { %652 = dma.done.wait [#allocation4], 512  }
 0x616   :  { %653 = vsyncadd [#allocation4], 4294966784 }
 0x617   :  { %507 = vsyncpa [#allocation3], 1 }
 0x618   :  { %508 = vsyncpa [#allocation4], 1 }

</bundles_post_ra>
